<compile_context>
chip_gen: v7x
topology: tpu7x:2x2x1
jax: 0.10.0
libtpu: 0.0.40
codegen_flags: <defaults>
</compile_context>

<pallas_src>
import jax
import jax.numpy as jnp
from jax.experimental import pallas as pl
from jax.experimental.pallas import tpu as pltpu


def classifier_kernel(h_ref, w_ref, corr_ref, o_ref):
    # h_ref:    (1, tile_T, C)      bf16  hidden rows for this (batch, T-tile)
    # w_ref:    (C, L_pad)          bf16  W_all, zero-padded along labels (resident)
    # corr_ref: (1, 1, L_pad)       f32   per-batch (h_last @ W_last + bias), padded
    # o_ref:    (1, tile_T, L_pad)  f32
    logits = jnp.dot(h_ref[0], w_ref[...],
                     preferred_element_type=jnp.float32)      # bf16 x bf16 -> f32 (MXU)
    o_ref[0] = logits + corr_ref[0]                           # (tile_T, L_pad) + (1, L_pad)


def _pick_tile_t(T):
    # Largest T tile <= 512 that divides T (big DMA blocks, pipeline depth).
    for cand in (512, 256, 128, 64, 32, 16, 8):
        if T % cand == 0:
            return cand
    return T


def finetune_classifier_head(hidden, w, b):
    """hidden: (B, T, C) bf16; w: (2C, L) f32 (== torch classifier.weight.T); b: (L,) f32."""
    B, T, C = hidden.shape
    L = b.shape[0]
    L_pad = pl.cdiv(L, 128) * 128                             # lane-dense output width

    # Split the concat-linear into two matmuls; only the big one runs in the kernel.
    w_all = w[:C].astype(jnp.bfloat16)                        # (C, L)  bf16 for MXU
    w_last = w[C:]                                            # (C, L)  f32 (tiny, XLA side)
    w_all_p = jnp.zeros((C, L_pad), jnp.bfloat16).at[:, :L].set(w_all)

    # Per-batch last-token correction, computed once outside the kernel.
    last = hidden[:, -1, :].astype(jnp.float32)               # (B, C)
    corr = last @ w_last + b[None, :]                         # (B, L) f32
    corr_p = jnp.zeros((B, 1, L_pad), jnp.float32).at[:, 0, :L].set(corr)

    tile_t = _pick_tile_t(T)
    assert T % tile_t == 0, "demo expects T divisible by the chosen T tile"
    grid = (B, T // tile_t)

    out = pl.pallas_call(
        classifier_kernel,
        out_shape=jax.ShapeDtypeStruct((B, T, L_pad), jnp.float32),
        grid=grid,
        in_specs=[
            pl.BlockSpec((1, tile_t, C), lambda bi, ti: (bi, ti, 0)),   # hidden tile
            pl.BlockSpec((C, L_pad), lambda bi, ti: (0, 0)),            # W_all (resident)
            pl.BlockSpec((1, 1, L_pad), lambda bi, ti: (bi, 0, 0)),     # per-batch correction
        ],
        out_specs=pl.BlockSpec((1, tile_t, L_pad), lambda bi, ti: (bi, ti, 0)),
        compiler_params=pltpu.CompilerParams(
            dimension_semantics=("parallel", "parallel"),
            vmem_limit_bytes=64 << 20),
    )(hidden, w_all_p, corr_p)

    return out[:, :, :L]                                      # drop lane padding


def stand_in_base_model(input_ids, attention_mask, embed_table):
    # TODO(synk): the pretrained AutoModel transformer (flash-attn, frozen weights)
    # has no in-script Pallas equivalent; replaced by a deterministic embedding
    # lookup producing bf16 hidden states of the same (B, T, C) shape/dtype.
    h = jnp.take(embed_table, input_ids, axis=0)              # (B, T, C) bf16
    return h * attention_mask[..., None].astype(h.dtype)


def reference_forward(hidden, w, b):
    # Faithful f32 reference of the PyTorch head (concat + Linear).
    B, T, C = hidden.shape
    h32 = hidden.astype(jnp.float32)
    last = jnp.broadcast_to(h32[:, -1:, :], (B, T, C))
    combined = jnp.concatenate([h32, last], axis=-1)          # (B, T, 2C)
    return combined @ w + b                                   # (B, T, L)


if __name__ == "__main__":
    B, T, C, L, V = 2, 64, 128, 4, 32   # batch, seq, hidden, num_labels, vocab

    key = jax.random.PRNGKey(0)
    k_ids, k_emb, k_w, k_b = jax.random.split(key, 4)

    input_ids = jax.random.randint(k_ids, (B, T), 0, V, dtype=jnp.int32)
    attention_mask = jnp.ones((B, T), dtype=jnp.int32)

    # deterministic synthetic parameters
    embed_table = (jax.random.normal(k_emb, (V, C), dtype=jnp.float32) * 0.1
                   ).astype(jnp.bfloat16)
    w = jax.random.normal(k_w, (2 * C, L), dtype=jnp.float32) * 0.05   # classifier weight.T
    b = jax.random.normal(k_b, (L,), dtype=jnp.float32) * 0.01         # classifier bias

    hidden = stand_in_base_model(input_ids, attention_mask, embed_table)

    logits = finetune_classifier_head(hidden, w, b)
    logits = jax.block_until_ready(logits)

    ref = reference_forward(hidden, w, b)
    assert logits.shape == (B, T, L)
    # Tolerance relaxed vs f32 reference because W_all runs in bf16 on the MXU.
    assert jnp.allclose(logits, ref, atol=2e-2, rtol=2e-2)

    print("KERNEL_OK")
</pallas_src>

<mosaic_0001>
module attributes {stable_mosaic.version = 11 : i64} {
  func.func @classifier_kernel(%arg0: i32, %arg1: i32, %arg2: memref<1x64x128xbf16, #tpu.memory_space<vmem>>, %arg3: memref<128x128xbf16, #tpu.memory_space<vmem>>, %arg4: memref<1x1x128xf32, #tpu.memory_space<vmem>>, %arg5: memref<1x64x128xf32, #tpu.memory_space<vmem>>) attributes {dimension_semantics = [#tpu.dimension_semantics<parallel>, #tpu.dimension_semantics<parallel>], iteration_bounds = array<i64: 2, 1>, scalar_prefetch = 0 : i64, scratch_operands = 0 : i64, tpu.core_type = #tpu.core_type<tc>, window_params = [{transform_indices = @transform_0, window_bounds = array<i64: 1, 64, 128>}, {pipeline_mode = #tpu.pipeline_mode<synchronous>, transform_indices = @transform_1, window_bounds = array<i64: 128, 128>}, {transform_indices = @transform_2, window_bounds = array<i64: 1, 1, 128>}, {transform_indices = @transform_3, window_bounds = array<i64: 1, 64, 128>}]} {
    %c0 = arith.constant 0 : index
    %c0_0 = arith.constant 0 : index
    %c0_1 = arith.constant 0 : index
    %0 = vector.load %arg2[%c0, %c0_0, %c0_1] : memref<1x64x128xbf16, #tpu.memory_space<vmem>>, vector<1x64x128xbf16>
    %1 = vector.shape_cast %0 : vector<1x64x128xbf16> to vector<64x128xbf16>
    %c0_2 = arith.constant 0 : index
    %c0_3 = arith.constant 0 : index
    %2 = vector.load %arg3[%c0_2, %c0_3] : memref<128x128xbf16, #tpu.memory_space<vmem>>, vector<128x128xbf16>
    %cst = arith.constant dense<0.000000e+00> : vector<64x128xf32>
    %3 = tpu.matmul %1, %2, %cst {dimension_numbers = #tpu.dot_dimension_numbers<[1], [0], [0], [1], [0, 0, 1, 1], [], []>} : vector<64x128xbf16>, vector<128x128xbf16>, vector<64x128xf32> -> vector<64x128xf32>
    %c0_4 = arith.constant 0 : index
    %c0_5 = arith.constant 0 : index
    %c0_6 = arith.constant 0 : index
    %4 = vector.load %arg4[%c0_4, %c0_5, %c0_6] : memref<1x1x128xf32, #tpu.memory_space<vmem>>, vector<1x1x128xf32>
    %5 = vector.shape_cast %4 : vector<1x1x128xf32> to vector<1x128xf32>
    %6 = vector.broadcast %5 : vector<1x128xf32> to vector<64x128xf32>
    %7 = arith.addf %3, %6 : vector<64x128xf32>
    %c0_7 = arith.constant 0 : index
    %c0_8 = arith.constant 0 : index
    %c0_9 = arith.constant 0 : index
    %8 = vector.load %arg5[%c0_7, %c0_8, %c0_9] : memref<1x64x128xf32, #tpu.memory_space<vmem>>, vector<1x64x128xf32>
    %9 = vector.shape_cast %8 : vector<1x64x128xf32> to vector<64x128xf32>
    %10 = vector.shape_cast %7 : vector<64x128xf32> to vector<1x64x128xf32>
    tpu.vector_store %arg5[%c0_7, %c0_8, %c0_9], %10 {strides = array<i32>} : memref<1x64x128xf32, #tpu.memory_space<vmem>>, vector<1x64x128xf32>,
    return
  }
  func.func @transform_0(%arg0: i32, %arg1: i32) -> (i32, i32, i32) {
    %c0_i32 = arith.constant 0 : i32
    %c0_i32_0 = arith.constant 0 : i32
    return %arg0, %arg1, %c0_i32 : i32, i32, i32
  }
  func.func @transform_1(%arg0: i32, %arg1: i32) -> (i32, i32) {
    %c0_i32 = arith.constant 0 : i32
    %c0_i32_0 = arith.constant 0 : i32
    %c0_i32_1 = arith.constant 0 : i32
    return %c0_i32, %c0_i32_0 : i32, i32
  }
  func.func @transform_2(%arg0: i32, %arg1: i32) -> (i32, i32, i32) {
    %c0_i32 = arith.constant 0 : i32
    %c0_i32_0 = arith.constant 0 : i32
    %c0_i32_1 = arith.constant 0 : i32
    return %arg0, %c0_i32, %c0_i32_0 : i32, i32, i32
  }
  func.func @transform_3(%arg0: i32, %arg1: i32) -> (i32, i32, i32) {
    %c0_i32 = arith.constant 0 : i32
    %c0_i32_0 = arith.constant 0 : i32
    return %arg0, %arg1, %c0_i32 : i32, i32, i32
  }
}

</mosaic_0001>

<bundles_post_ra>
// kernel: tpu_custom_call.1
= control target key start
LH: loop header
LB: loop body
LE: loop exit
PB: predicated region body
PF: predicated region fallthrough
CT: control target
= control target key end

     0   :  { %s1226_s0 = inlined_call_operand.hbm [shape: bf16[2,64,128], index: 0, kind: input, shape index: {}]   ;;  %s1227_s1 = inlined_call_operand.hbm [shape: bf16[128,128], index: 1, kind: input, shape index: {}]   ;;  %s1228_s2 = inlined_call_operand.hbm [shape: f32[2,1,128], index: 2, kind: input, shape index: {}]   ;;  %s1229_s3 = inlined_call_operand.hbm [shape: f32[2,64,128], index: 3, kind: output, shape index: {}]  }
   0x1   :  { %1237 = sst [smem:[#allocation13_spill]] %s1226_s0 }
   0x2   :  { %8 = vsyncpa [#allocation3], 0 }
   0x3   :  { %10 = vsyncpa [#allocation3 + $0x1], 0 }
   0x4   :  { %11 = vsyncpa [#allocation6], 0 }
   0x5   :  { %12 = vsyncpa [#allocation4], 0 }
   0x6   :  { %14 = vsyncpa [#allocation4 + $0x1], 0  ;;  %s949_s12 = smov 0   ;;  %s951_s13 = smov 0  }
   0x7   :  { %s953_s14 = smov 0   ;;  %s955_s15 = smov 0  }
   0x8   :  { %s957_s16 = smov 0   ;;  %s959_s17 = smov 0  }
   0x9 LB: > { %s32_s18 = sadd.s32 1, %s915_s16  ;;  %s41_s19 = sadd.s32 1, %s907_s14  ;;  %s919_s17 = sphi %s959_s17, %s20_s17   ;;  %s915_s16 = sphi %s957_s16, %s1260_s16   ;;  %s911_s15 = sphi %s955_s15, %s1259_s15   ;;  %s907_s14 = sphi %s953_s14, %s1258_s14   ;;  %s903_s13 = sphi %s951_s13, %s1257_s13   ;;  %s899_s12 = sphi %s949_s12, %s1256_s12  }
   0xa   : > { %p34_p0 = scmp.ge.s32.totalorder %s32_s18, 2  ;;  %p48_p1 = scmp.ne.s32.totalorder %s907_s14, %s903_s13 }
   0xb   : > { %p49_p2 = scmp.eq.s32.totalorder %s919_s17, 0  ;;  %p673_p6 = scmp.lt.s32.totalorder %s919_s17, 2 }
   0xc   : > { %s1262_s18 = smov (%p34_p0, %s32_s18), 0  ;;  %s166_s22 = sand.u32 1, %s919_s17  }
   0xd   : > { %p989_p3 = por %p49_p2, %p48_p1  ;;  %s36_s21 = ssub.s32 %s915_s16, %s1262_s18 }
   0xe   : > { %p39_p5 = scmp.eq.s32.totalorder %s36_s21, 0  ;;  %s168_s23 = sand.u32 1, %s907_s14  }
   0xf   : > { %s567_s25 = sshll.u32 %s168_s23, 5  ;;  %s593_s26 = sshll.u32 %s915_s16, 9 }
  0x10   : > { %s1000_s24 = scalar_select %p39_p5, %s907_s14, %s41_s19  }
  0x11   : > { %s1239_s0 = sld [smem:[#allocation13_spill]]  ;;  %s170_s30 = scalar_lea.vmem [#allocation2], %s567_s25 }
  0x12   : > { %s179_s4 = sshll.u32 %s170_s30, 4  ;;  %p1014_p7 = pnand %p673_p6, %p989_p3  ;;  %s1010_s4 = int_to_ptr.vmem [resolvable:$true] %s179_s4 }
  0x13   : > { %s1018_s6 = scalar_lea.sflag [#allocation3], %s166_s22 }
  0x14   : > { %p743_p9 = pneg %p1014_p7 }
  0x17   : > { %s1008_s29 = scalar_lea.hbm %s1239_s0, %s593_s26  ;;  %s746_s10 = scalar_lea.hbm %s1239_s0, 1024 }
  0x18   : > { %s741_s7 = scalar_lea.hbm %s1008_s29, 512  ;;  %p747_p12 = scmp.lt.u32.totalorder %s1008_s29, %s1239_s0 }
  0x19   : > { %p742_p8 = scmp.ne.s32.totalorder %s1008_s29, %s741_s7  ;;  %p748_p13 = scmp.lt.u32.totalorder %s746_s10, %s741_s7 }
  0x1a   : > { %p750_p2 = scmp.lt.u32.totalorder %s741_s7, %s1008_s29 }
  0x1b   : > { %p744_p10 = pnand %p743_p9, %p742_p8  ;;  %p749_p0 = por %p748_p13, %p747_p12 }
  0x1d   : > { %p745_p11 = pneg %p744_p10  ;;  %p751_p3 = por %p750_p2, %p749_p0 }
  0x1f   : > { %p752_p5 = pnand %p751_p3, %p745_p11 }
  0x21   : > { %755 = shalt.err (!%p752_p5)
}
  0x22   : > { %s756_s20 = scalar_lea.vmem %s1010_s4, 512  ;;  %s921_s21 = smov [#allocation2]  }
  0x23   : > { %p757_p6 = scmp.ne.s32.totalorder %s1010_s4, %s756_s20  ;;  %s761_s22 = sshll.u32 %s921_s21, 4  ;;  %s762_s22 = int_to_ptr.vmem [resolvable:$false] %s761_s22 }
  0x24   : > { %s763_s25 = scalar_lea.vmem %s762_s22, 1024  ;;  %p764_p4 = scmp.lt.s32.totalorder %s1010_s4, %s762_s22 }
  0x25   : > { %p759_p8 = pnand %p757_p6, %p743_p9  ;;  %p765_p12 = scmp.lt.s32.totalorder %s763_s25, %s756_s20 }
  0x27   : > { %p760_p10 = pneg %p759_p8  ;;  %p766_p13 = por %p765_p12, %p764_p4 }
  0x29   : > { %p767_p0 = pnand %p766_p13, %p760_p10 }
  0x2b   : > { %770 = shalt.err (!%p767_p0)
}
  0x2c   : > { %s1230_s26 = smov 64   ;;  %s1231_s27 = smov 4  }
  0x2d   : > { %664 = dma.hbm_to_vmem [thread:$0]  (!%p1014_p7), %s1008_s29, 512, %s1010_s4, %s1018_s6, %s1230_s26, %s1230_s26, %s1231_s27  }
  0x2e   : > { %s1050_s28 = sadd.s32 4294967295, %s919_s17   ;;  %s563_s30 = sadd.s32 4294967294, %s919_s17  }
  0x2f   : > { %p54_p4 = scmp.ne.s32.totalorder %s903_s13, %s899_s12  ;;  %p1232_p11 = scmp.eq.s32.totalorder %s1050_s28, 0 }
  0x30   : > { %p127_p2 = scmp.eq.s32.totalorder %s1050_s28, 1  ;;  %p133_p3 = scmp.eq.s32.totalorder %s563_s30, 1 }
  0x31   : > { %p564_p5 = scmp.ge.s32.totalorder %s919_s17, 1  ;;  %p1060_p6 = por %p1232_p11, %p54_p4 }
  0x32   : > { %p1067_p8 = por %p127_p2, %p48_p1  ;;  %p1071_p10 = por %p133_p3, %p54_p4 }
  0x33   : > { %s1241_s7 = scalar_select %p1060_p6, 1, 0 }
  0x34   : > { %s1242_s29 = scalar_select %p1067_p8, 1, 0 }
  0x35   : > { %s1243_s4 = scalar_select %p1071_p10, 1, 0 }
  0x36   : > { %p140_p12 = scmp.lt.s32.totalorder %s919_s17, 3  ;;  %s924_s9 = smov [#allocation5]  }
  0x37   : > { %s152_s10 = sshll.u32 %s924_s9, 4  ;;  %s570_s11 = sshll.u32 %s915_s16, 4  ;;  %s1080_s10 = int_to_ptr.vmem [resolvable:$true] %s152_s10 }
  0x38   : > { %p1076_p13 = pnand %p564_p5, %p140_p12  ;;  %s1088_s21 = scalar_lea.hbm %s1228_s2, %s570_s11 }
  0x39   : > { %s192_s22 = scalar_lea.vmem [#allocation7], %s168_s23  ;;  %s771_s9 = scalar_lea.hbm %s1088_s21, 16 }
  0x3a   : > { %s1244_s8 = scalar_select %p1076_p13, 1, 0 }
  0x3b   : > { %p657_p1 = pneg %p1076_p13  ;;  %s199_s25 = sshll.u32 %s192_s22, 4  ;;  %s200_s25 = int_to_ptr.vmem [resolvable:$true] %s199_s25 }
  0x3c   : > { %p772_p4 = scmp.ne.s32.totalorder %s1088_s21, %s771_s9  ;;  %s776_s20 = scalar_lea.hbm %s1228_s2, 32 }
  0x3d   : > { %p1094_p0 = pnand %p657_p1, %p1232_p11  ;;  %p777_p5 = scmp.lt.u32.totalorder %s1088_s21, %s1228_s2 }
  0x3e   : > { %p774_p2 = pnand %p772_p4, %p743_p9  ;;  %p778_p12 = scmp.lt.u32.totalorder %s776_s20, %s771_s9 }
  0x3f   : > { %s1245_s30 = scalar_select %p1094_p0, 1, 0 }
  0x40   : > { %p775_p3 = pneg %p774_p2  ;;  %p779_p1 = por %p778_p12, %p777_p5 }
  0x41   : > { %p780_p11 = scmp.lt.u32.totalorder %s771_s9, %s1088_s21 }
  0x43   : > { %p781_p10 = por %p780_p11, %p779_p1 }
  0x45   : > { %p782_p8 = pnand %p781_p10, %p775_p3 }
  0x47   : > { %785 = shalt.err (!%p782_p8)
}
  0x48   : > { %s786_s23 = scalar_lea.vmem %s200_s25, 16  ;;  %s925_s22 = smov [#allocation7]  }
  0x49   : > { %p787_p6 = scmp.ne.s32.totalorder %s200_s25, %s786_s23  ;;  %s791_s11 = sshll.u32 %s925_s22, 4  ;;  %s792_s11 = int_to_ptr.vmem [resolvable:$false] %s791_s11 }
  0x4a   : > { %s793_s19 = scalar_lea.vmem %s792_s11, 32  ;;  %p794_p13 = scmp.lt.s32.totalorder %s200_s25, %s792_s11 }
  0x4b   : > { %p789_p4 = pnand %p787_p6, %p743_p9  ;;  %p795_p0 = scmp.lt.s32.totalorder %s793_s19, %s786_s23 }
  0x4d   : > { %p790_p2 = pneg %p789_p4  ;;  %p796_p5 = por %p795_p0, %p794_p13 }
  0x4f   : > { %p797_p12 = pnand %p796_p5, %p790_p2 }
  0x51   : > { %800 = shalt.err (!%p797_p12)
}
  0x52   : > { %667 = dma.hbm_to_vmem [thread:$0]  (!%p1014_p7), %s1088_s21, 16, %s200_s25, %s1018_s6  }
  0x53   : > { %s801_s9 = scalar_lea.hbm %s1227_s1, 1024  ;;  %p1246_p11 = scmp.ne.s32.totalorder %s1245_s30, 0 }
  0x54   : > { %p802_p9 = scmp.ne.s32.totalorder %s1227_s1, %s801_s9  ;;  %p808_p13 = scmp.lt.u32.totalorder %s801_s9, %s1227_s1 }
  0x55   : > { %p803_p6 = pneg %p1246_p11 }
  0x57   : > { %p804_p8 = pnand %p803_p6, %p802_p9 }
  0x59   : > { %p805_p10 = pneg %p804_p8 }
  0x5b   : > { %p810_p0 = pnand %p808_p13, %p805_p10 }
  0x5d   : > { %813 = shalt.err (!%p810_p0)
}
  0x5e   : > { %s814_s5 = scalar_lea.vmem %s1080_s10, 1024  ;;  %p822_p4 = scmp.lt.s32.totalorder %s1080_s10, %s1080_s10 }
  0x5f   : > { %p815_p7 = scmp.ne.s32.totalorder %s1080_s10, %s814_s5  ;;  %p823_p2 = scmp.lt.s32.totalorder %s814_s5, %s814_s5 }
  0x61   : > { %p817_p3 = pnand %p815_p7, %p803_p6  ;;  %p824_p5 = por %p823_p2, %p822_p4 }
  0x63   : > { %p818_p1 = pneg %p817_p3 }
  0x65   : > { %p825_p12 = pnand %p824_p5, %p818_p1 }
  0x67   : > { %828 = shalt.err (!%p825_p12)
}
  0x68   : > { %s1247_s0 = smov 4   ;;  %s1248_s6 = smov 64  }
  0x69   : > { %660 = dma.hbm_to_vmem [thread:$0]  (!%p1246_p11), %s1227_s1, 1024, %s1080_s10, [#allocation6], %s1248_s6, %s1248_s6, %s1247_s0  }
  0x6a   : > { %p1249_p9 = scmp.ne.s32.totalorder %s1244_s8, 0 }
  0x6b   : > { %s210_s11 = sand.u32 (!%p1249_p9), 1, %s1050_s28   ;;  %s1146_s19 = sand.u32 (!%p1249_p9), 1, %s903_s13  }
  0x6c   : > { %208 = sbr.rel (%p1249_p9) target bundleno = 387 (0x183), region = 32  ;;  %s572_s26 = sshll.u32 (!%p1249_p9), %s1146_s19, 5 }
  0x6d   : > { %s211_s30 = scalar_lea.sflag (!%p1249_p9), [#allocation3], %s210_s11  ;;  %s1149_s27 = scalar_lea.vmem (!%p1249_p9), [#allocation2], %s572_s26 }
  0x6e   : > { %p1250_p6 = scmp.ne.s32.totalorder (!%p1249_p9), %s1241_s7, 0 }
  0x73   : > { %882 = dma.done.wait (%p1250_p6), %s211_s30, 512  }
  0x74   : > { %884 = vsyncadd (%p1250_p6), %s211_s30, 4294966784  ;;  %p1251_p11 = scmp.eq.s32.totalorder %s1050_s28, 0 }
  0x76   : > { %886 = dma.done.wait (%p1251_p11), [#allocation6], 1024   ;;  %p1252_p8 = pmov %p1251_p11 }
  0x77   : > { %s226_s8 = scalar_lea.vmem [#allocation7], %s1146_s19 }
  0x78   : > { %888 = vsyncadd (%p1252_p8), [#allocation6], 4294966272 }
  0x79   : > { %890 = dma.done.wait (%p1250_p6), %s211_s30, 16  }
  0x7a   : > { %892 = vsyncadd (%p1250_p6), %s211_s30, 4294967280  ;;  %v729_v0 = vld [vmem:[#allocation5] sm:$0xff]   ;;  %v730_v1 = vld [vmem:[#allocation5 + $0x8] sm:$0xff]   ;;  %s574_s28 = sshll.u32 %s1146_s19, 6  ;;  %s594_s9 = sshll.u32 %s911_s15, 10 }
  0x7b   : > { %607 = vmatprep.subr.bf16.mxu0 %v729_v0  ;;  %631 = vmatprep.subr.bf16.mxu1 %v729_v0  ;;  %v731_v2 = vld [vmem:[#allocation5 + $0x10] sm:$0xff]   ;;  %v732_v3 = vld [vmem:[#allocation5 + $0x18] sm:$0xff]   ;;  %v737_v4 = vld [vmem:[%s1149_s27] sm:$0xff]   ;;  %s252_s7 = scalar_lea.vmem [#allocation8], %s574_s28  ;;  %s1177_s23 = scalar_lea.hbm %s1229_s3, %s594_s9 }
  0x7c   : > { %608 = vmatpush3.bf16.msra.mxu0 %v729_v0  ;;  %639 = vmatpush3.bf16.msra.mxu1 %v729_v0  ;;  %v738_v5 = vld [vmem:[%s1149_s27 + $0x10] sm:$0xff]   ;;  %v733_v6 = vld [vmem:[#allocation5 + $0x20] sm:$0xff]   ;;  %v734_v7 = vld [vmem:[#allocation5 + $0x28] sm:$0xff]   ;;  %s448_s10 = sshll.u32 %s252_s7, 4  ;;  %s433_s22 = scalar_lea.sflag [#allocation4], %s1146_s19  ;;  %s1172_s10 = int_to_ptr.vmem [resolvable:$true] %s448_s10 }
  0x7d   : > { %609 = vmatprep.subr.bf16.mxu0 %v730_v1  ;;  %632 = vmatprep.subr.bf16.mxu1 %v730_v1  ;;  %v735_v8 = vld [vmem:[#allocation5 + $0x30] sm:$0xff]   ;;  %v736_v9 = vld [vmem:[#allocation5 + $0x38] sm:$0xff]   ;;  %v739_v10 = vld [vmem:[%s1149_s27 + $0x8] sm:$0xff]   ;;  %s829_s5 = scalar_lea.vmem %s1172_s10, 1024  ;;  %p1253_p13 = scmp.ne.s32.totalorder %s1242_s29, 0 }
  0x7e   : > { %623 = vmatprep.mubr.bf16.mxu0 %v737_v4  ;;  %627 = vmatprep.mubr.bf16.mxu1 %v738_v5  ;;  %v740_v11 = vld [vmem:[%s1149_s27 + $0x18] sm:$0xff]   ;;  %v575_v12 = vld [vmem:[%s226_s8] ss:$0 sm:$0xff]  ;;  %p830_p10 = scmp.ne.s32.totalorder %s1172_s10, %s829_s5  ;;  %s926_s0 = smov [#allocation8]  }
  0x7f   : > { %s833_s6 = sshll.u32 %s926_s0, 4  ;;  %s834_s6 = int_to_ptr.vmem [resolvable:$false] %s833_s6 }
  0x80   : > { %610 = vmatpush3.bf16.msra.mxu0 %v730_v1  ;;  %640 = vmatpush3.bf16.msra.mxu1 %v730_v1  ;;  %p831_p0 = pnand %p830_p10, %p1253_p13  ;;  %s835_s21 = scalar_lea.vmem %s834_s6, 2048 }
  0x81   : > { %611 = vmatprep.subr.bf16.mxu0 %v731_v2  ;;  %633 = vmatprep.subr.bf16.mxu1 %v731_v2  ;;  %p836_p3 = scmp.lt.s32.totalorder %s1172_s10, %s834_s6  ;;  %p837_p1 = scmp.lt.s32.totalorder %s835_s21, %s829_s5 }
  0x82   : > { %p832_p7 = pneg %p831_p0 }
  0x83   : > { %p838_p4 = por %p837_p1, %p836_p3 }
  0x84   : > { %612 = vmatpush3.bf16.msra.mxu0 %v731_v2  ;;  %641 = vmatpush3.bf16.msra.mxu1 %v731_v2 }
  0x85   : > { %613 = vmatprep.subr.bf16.mxu0 %v732_v3  ;;  %634 = vmatprep.subr.bf16.mxu1 %v732_v3  ;;  %p839_p2 = pnand %p838_p4, %p832_p7 }
  0x88   : > { %614 = vmatpush3.bf16.msra.mxu0 %v732_v3  ;;  %642 = vmatpush3.bf16.msra.mxu1 %v732_v3 }
  0x89   : > { %615 = vmatprep.subr.bf16.mxu0 %v733_v6  ;;  %635 = vmatprep.subr.bf16.mxu1 %v733_v6 }
  0x8c   : > { %616 = vmatpush3.bf16.msra.mxu0 %v733_v6  ;;  %643 = vmatpush3.bf16.msra.mxu1 %v733_v6 }
  0x8d   : > { %617 = vmatprep.subr.bf16.mxu0 %v734_v7  ;;  %636 = vmatprep.subr.bf16.mxu1 %v734_v7 }
  0x90   : > { %618 = vmatpush3.bf16.msra.mxu0 %v734_v7  ;;  %644 = vmatpush3.bf16.msra.mxu1 %v734_v7 }
  0x91   : > { %619 = vmatprep.subr.bf16.mxu0 %v735_v8  ;;  %637 = vmatprep.subr.bf16.mxu1 %v735_v8 }
  0x94   : > { %620 = vmatpush3.bf16.msra.mxu0 %v735_v8  ;;  %645 = vmatpush3.bf16.msra.mxu1 %v735_v8 }
  0x95   : > { %621 = vmatprep.subr.bf16.mxu0 %v736_v9  ;;  %638 = vmatprep.subr.bf16.mxu1 %v736_v9 }
  0x98   : > { %622 = vmatpush3.bf16.msra.mxu0 %v736_v9  ;;  %646 = vmatpush3.bf16.msra.mxu1 %v736_v9 }
  0x9b   : > { %624 = vmatmul.mubr.bf16.vlgmr.msra.gmra.mrb[0].mxu0 %v739_v10  ;;  %628 = vmatmul.mubr.bf16.vlgmr.msra.gmra.mrb[0].mxu1 %v740_v11 }
 0x16e   : > { %v625_v13 = vpop.f32.mrb[0].mxu0  ;;  %v629_v14 = vpop.f32.mrb[0].mxu1 }
 0x16f   : > { %v402_v15 = vadd.f32 %v625_v13, %v575_v12  ;;  %v418_v16 = vadd.f32 %v629_v14, %v575_v12  ;;  %v393_v17 = vpop.f32.mrb[1].mxu0  ;;  %v409_v18 = vpop.f32.mrb[1].mxu1 }
 0x170   : > { %v394_v19 = vadd.f32 %v575_v12, %v393_v17  ;;  %v410_v20 = vadd.f32 %v575_v12, %v409_v18  ;;  %v626_v21 = vpop.f32.mrb[2].mxu0  ;;  %v630_v22 = vpop.f32.mrb[2].mxu1 }
 0x171   : > { %426 = vst [vmem:[%s252_s7 + $0x10] sm:$0xff] %v402_v15  ;;  %430 = vst [vmem:[%s252_s7 + $0x30] sm:$0xff] %v418_v16  ;;  %v405_v23 = vadd.f32 %v626_v21, %v575_v12  ;;  %v421_v24 = vadd.f32 %v630_v22, %v575_v12  ;;  %v396_v25 = vpop.f32.mrb[3].mxu0  ;;  %v412_v26 = vpop.f32.mrb[3].mxu1 }
 0x172   : > { %424 = vst [vmem:[%s252_s7] sm:$0xff] %v394_v19  ;;  %428 = vst [vmem:[%s252_s7 + $0x20] sm:$0xff] %v410_v20  ;;  %v397_v27 = vadd.f32 %v575_v12, %v396_v25  ;;  %v413_v28 = vadd.f32 %v575_v12, %v412_v26 }
 0x173   : > { %427 = vst [vmem:[%s252_s7 + $0x18] sm:$0xff] %v405_v23  ;;  %431 = vst [vmem:[%s252_s7 + $0x38] sm:$0xff] %v421_v24 }
 0x174   : > { %425 = vst [vmem:[%s252_s7 + $0x8] sm:$0xff] %v397_v27  ;;  %429 = vst [vmem:[%s252_s7 + $0x28] sm:$0xff] %v413_v28 }
 0x175   : > { %842 = shalt.err (!%p839_p2)
}
 0x176   : > { %s843_s25 = scalar_lea.hbm %s1177_s23, 1024  ;;  %s847_s30 = scalar_lea.hbm %s1229_s3, 2048 }
 0x177   : > { %p844_p5 = scmp.ne.s32.totalorder %s1177_s23, %s843_s25  ;;  %p848_p6 = scmp.lt.u32.totalorder %s1177_s23, %s1229_s3 }
 0x178   : > { %p849_p11 = scmp.lt.u32.totalorder %s847_s30, %s843_s25  ;;  %p851_p10 = scmp.lt.u32.totalorder %s843_s25, %s1177_s23 }
 0x179   : > { %p845_p12 = pnand %p844_p5, %p1253_p13 }
 0x17a   : > { %p850_p8 = por %p849_p11, %p848_p6 }
 0x17b   : > { %p846_p9 = pneg %p845_p12 }
 0x17c   : > { %p852_p0 = por %p851_p10, %p850_p8 }
 0x17e   : > { %p853_p7 = pnand %p852_p0, %p846_p9 }
 0x180   : > { %856 = shalt.err (!%p853_p7)
}
 0x181   : > { %s927_s28 = smov 128   ;;  %s928_s7 = smov 8  }
 0x182   : > { %655 = dma.vmem_to_hbm [thread:$0]  (%p1253_p13), %s1172_s10, 1024, %s1177_s23, %s433_s22, %s927_s28, %s927_s28, %s928_s7  }
 0x183 PF: > { %s463_s9 = sand.u32 1, %s899_s12   ;;  %p1254_p3 = scmp.ne.s32.totalorder %s1243_s4, 0 }
 0x184   : > { %p1255_p1 = scmp.ge.s32.totalorder %s919_s17, 2  ;;  %s464_s15 = scalar_lea.sflag [#allocation4], %s463_s9 }
 0x186   : > { %p669_p4 = pnand %p1255_p1, %p1254_p3 }
 0x188   : > { %894 = dma.done.wait (!%p669_p4), %s464_s15, 1024  }
 0x189   : > { %896 = vsyncadd (!%p669_p4), %s464_s15, 4294966272  ;;  %s20_s17 = sadd.s32 1, %s919_s17   ;;  %s1256_s12 = smov %s903_s13 }
 0x18a   : > { %p17_p2 = scmp.ge.s32.totalorder %s20_s17, 4   ;;  %s1257_s13 = smov %s907_s14 }
 0x18b   : > { %s1258_s14 = smov %s1000_s24  ;;  %s1259_s15 = smov %s915_s16 }
 0x18c   : > { %s1260_s16 = smov %s1262_s18  ;;  %19 = sbr.rel (!%p17_p2) target bundleno = 9 (0x9), region = 92 }
 0x193   :  { %469 = vsyncpa [#allocation3], 1 }
 0x194   :  { %471 = vsyncpa [#allocation3 + $0x1], 1 }
 0x195   :  { %472 = vsyncpa [#allocation6], 1 }
 0x196   :  { %473 = vsyncpa [#allocation4], 1 }
 0x197   :  { %475 = vsyncpa [#allocation4 + $0x1], 1 }

</bundles_post_ra>
